<compile_context>
chip_gen: v5e
topology: v5e:2x2
jax: 0.10.0
libtpu: 0.0.40
codegen_flags: <defaults>
</compile_context>

<pallas_src>
import jax
import jax.numpy as jnp
from jax.experimental import pallas as pl
from jax.experimental.pallas import tpu as pltpu


def _round_up(x, m):
    return (x + m - 1) // m * m


def _largest_tile(dim, cap):
    """Largest multiple of 128 that divides `dim`, capped at `cap`."""
    best = 128
    c = 128
    while c <= min(dim, cap):
        if dim % c == 0:
            best = c
        c += 128
    return best


def _device_kind():
    try:
        return jax.devices()[0].device_kind.lower()
    except Exception:
        return ""


def _tile_targets(kind):
    """(tm, tn, tk) targets per TPU generation (compute-bound tile sizes)."""
    if "v5" in kind:
        return 512, 512, 512
    if "v6" in kind:
        return 1024, 1024, 1024
    if "v7" in kind:
        return 768, 768, 1024
    return 512, 512, 512          # safe default


# --------------------------------------------------------------------------
# Kernels
# --------------------------------------------------------------------------
def _residual_linear_small_kernel(x_ref, w_ref, b_ref, o_ref):
    """Small-D fast path: whole W resident, single pass, out = x@W + b + x."""
    x = x_ref[...]
    y = jnp.dot(x.astype(jnp.bfloat16), w_ref[...],
                preferred_element_type=jnp.float32)
    o_ref[...] = (y + b_ref[...] + x.astype(jnp.float32)).astype(o_ref.dtype)


def _residual_linear_kernel(x_ref, w_ref, xres_ref, b_ref, o_ref):
    """General path: accumulate x@W directly into the f32 output block across
    the K grid axis; bias + residual are folded into the k==0 init."""
    k = pl.program_id(2)

    @pl.when(k == 0)
    def _init():
        o_ref[...] = xres_ref[...].astype(jnp.float32) + b_ref[...]

    o_ref[...] += jnp.dot(x_ref[...].astype(jnp.bfloat16), w_ref[...],
                          preferred_element_type=jnp.float32)


# --------------------------------------------------------------------------
# Wrapper
# --------------------------------------------------------------------------
def residual_linear(x, w, b):
    """Residual(Linear) forward via a fused Pallas TPU kernel.

    x: (M, D), w: (D, D), b: (1, D)  ->  (M, D) in x.dtype.
    """
    M, D = x.shape
    assert w.shape == (D, D) and b.shape == (1, D)
    out_dtype = x.dtype
    kind = _device_kind()
    tm_t, tn_t, tk_t = _tile_targets(kind)

    D_pad = _round_up(D, 128)

    # Pad + cast W once (weights are static across calls in a real model);
    # bias stays f32.  pad+astype written as one expression so XLA fuses it.
    w_mm = (jnp.pad(w, ((0, D_pad - D), (0, D_pad - D))) if D_pad != D else w
            ).astype(jnp.bfloat16)
    b_f32 = (jnp.pad(b, ((0, 0), (0, D_pad - D))) if D_pad != D else b
             ).astype(jnp.float32)

    # ---------------- small-D fast path: W fully resident, 1-D grid over M ---
    if D_pad <= 512:
        M_pad = _round_up(max(M, 8), 8)
        tm = min(M_pad, 512)
        M_pad = _round_up(M_pad, tm)
        # v7x: keep >= 2 parallel blocks so the second TensorCore gets work.
        if "v7" in kind and M_pad // tm == 1 and M_pad >= 256:
            tm = _round_up((M_pad + 1) // 2, 128)
            M_pad = _round_up(M_pad, tm)

        need_pad = (M_pad, D_pad) != (M, D)
        x_p = jnp.pad(x, ((0, M_pad - M), (0, D_pad - D))) if need_pad else x

        vmem_bytes = (2 * tm * D_pad * 4        # x tile (f32, double-buffered)
                      + 2 * D_pad * D_pad * 2   # resident W (bf16)
                      + 2 * 8 * D_pad * 4       # bias
                      + 2 * tm * D_pad * 4)     # output tile
        vmem_limit = int(min(max(vmem_bytes + (4 << 20), 16 << 20), 56 << 20))

        cost = pl.CostEstimate(
            flops=2 * M_pad * D_pad * D_pad + 2 * M_pad * D_pad,
            transcendentals=0,
            bytes_accessed=(x_p.size * 4 + w_mm.size * 2 + b_f32.size * 4
                            + M_pad * D_pad * 4),
        )

        out = pl.pallas_call(
            _residual_linear_small_kernel,
            out_shape=jax.ShapeDtypeStruct((M_pad, D_pad), out_dtype),
            grid_spec=pltpu.PrefetchScalarGridSpec(
                num_scalar_prefetch=0,
                grid=(M_pad // tm,),
                in_specs=[
                    pl.BlockSpec((tm, D_pad), lambda i: (i, 0)),      # x
                    pl.BlockSpec((D_pad, D_pad), lambda i: (0, 0)),   # W resident
                    pl.BlockSpec((1, D_pad), lambda i: (0, 0)),       # bias
                ],
                out_specs=pl.BlockSpec((tm, D_pad), lambda i: (i, 0)),
            ),
            compiler_params=pltpu.CompilerParams(
                dimension_semantics=("parallel",),
                vmem_limit_bytes=vmem_limit,
            ),
            cost_estimate=cost,
        )(x_p, w_mm, b_f32)

        if (M_pad, D_pad) != (M, D):
            out = out[:M, :D]
        return out

    # ---------------- general tiled path (D_pad > 512) -----------------------
    tn = _largest_tile(D_pad, tn_t)
    tk = _largest_tile(D_pad, tk_t)

    M_pad = _round_up(max(M, 16), 16)           # bf16 x packs (16,128) sublanes
    if M_pad <= tm_t:
        tm = M_pad
    else:
        tm = tm_t
        M_pad = _round_up(M_pad, tm)
    # v7x: keep >= 2 parallel blocks so the second TensorCore gets work.
    if "v7" in kind and (M_pad // tm) * (D_pad // tn) == 1 and M_pad >= 256:
        tm = _round_up((M_pad + 1) // 2, 128)
        M_pad = _round_up(M_pad, tm)

    # x is re-read D_pad/tn times by the matmul stream and once by the residual
    # stream.  Make one bf16 copy (pad + cast fused) when the reuse factor pays
    # for it; otherwise stream the original f32 array and cast inside the kernel.
    need_pad = (M_pad, D_pad) != (M, D)
    x_padded = jnp.pad(x, ((0, M_pad - M), (0, D_pad - D))) if need_pad else x
    if D_pad // tn >= 2:
        x_in = x_padded.astype(jnp.bfloat16)
    else:
        x_in = x_padded
    x_bytes = x_in.dtype.itemsize

    grid = (M_pad // tm, D_pad // tn, D_pad // tk)

    vmem_bytes = (2 * tm * tk * x_bytes         # x matmul stream
                  + 2 * tk * tn * 2             # W (bf16)
                  + 2 * tm * tn * x_bytes       # x residual stream
                  + 2 * 8 * tn * 4              # bias
                  + 2 * tm * tn * 4)            # f32 output / accumulator
    vmem_limit = int(min(max(vmem_bytes + (4 << 20), 16 << 20), 56 << 20))

    cost = pl.CostEstimate(
        flops=2 * M_pad * D_pad * D_pad + 2 * M_pad * D_pad,
        transcendentals=0,
        bytes_accessed=(x_in.size * x_bytes * (1 + D_pad // tn)
                        + w_mm.size * 2 * (M_pad // tm)
                        + b_f32.size * 4 + M_pad * D_pad * 4),
    )

    out = pl.pallas_call(
        _residual_linear_kernel,
        out_shape=jax.ShapeDtypeStruct((M_pad, D_pad), jnp.float32),
        grid_spec=pltpu.PrefetchScalarGridSpec(
            num_scalar_prefetch=0,
            grid=grid,
            in_specs=[
                pl.BlockSpec((tm, tk), lambda i, j, k: (i, k)),    # x (matmul)
                pl.BlockSpec((tk, tn), lambda i, j, k: (k, j)),    # W
                pl.BlockSpec((tm, tn), lambda i, j, k: (i, j)),    # x (residual)
                pl.BlockSpec((1, tn), lambda i, j, k: (0, j)),     # bias
            ],
            out_specs=pl.BlockSpec((tm, tn), lambda i, j, k: (i, j)),
        ),
        compiler_params=pltpu.CompilerParams(
            dimension_semantics=("parallel", "parallel", "arbitrary"),
            vmem_limit_bytes=vmem_limit,
        ),
        cost_estimate=cost,
    )(x_in, w_mm, x_in, b_f32)

    if out.dtype != out_dtype:
        out = out.astype(out_dtype)
    if (M_pad, D_pad) != (M, D):
        out = out[:M, :D]
    return out


if __name__ == "__main__":
    # Small shapes: batch=2, seq=8, hidden=32  ->  x flattened to (16, 32).
    B, S, D = 2, 8, 32
    key = jax.random.PRNGKey(0)
    kx, kw, kb = jax.random.split(key, 3)

    x3 = jax.random.normal(kx, (B, S, D), dtype=jnp.float32)
    w = jax.random.normal(kw, (D, D), dtype=jnp.float32) * (1.0 / jnp.sqrt(D))
    b = jax.random.normal(kb, (1, D), dtype=jnp.float32) * 0.01

    x2 = x3.reshape(B * S, D)                  # glue reshape in plain JAX
    out = residual_linear(x2, w, b)
    out = out.reshape(B, S, D)
    jax.block_until_ready(out)

    # Reference: Residual(Linear)(x) = x @ W + b + x (f32). bf16 matmul inputs
    # with f32 accumulation -> loose tolerance.
    ref = x3 @ w + b[None] + x3
    assert jnp.allclose(out, ref, atol=5e-2, rtol=5e-2), "mismatch vs reference"

    print("KERNEL_OK")
</pallas_src>

<mosaic_0001>
module attributes {stable_mosaic.version = 11 : i64} {
  func.func @_residual_linear_small_kernel(%arg0: i32, %arg1: memref<16x128xf32, #tpu.memory_space<vmem>>, %arg2: memref<128x128xbf16, #tpu.memory_space<vmem>>, %arg3: memref<1x128xf32, #tpu.memory_space<vmem>>, %arg4: memref<16x128xf32, #tpu.memory_space<vmem>>) attributes {dimension_semantics = [#tpu.dimension_semantics<parallel>], iteration_bounds = array<i64: 1>, scalar_prefetch = 0 : i64, scratch_operands = 0 : i64, tpu.core_type = #tpu.core_type<tc>, window_params = [{transform_indices = @transform_0, window_bounds = array<i64: 16, 128>}, {pipeline_mode = #tpu.pipeline_mode<synchronous>, transform_indices = @transform_1, window_bounds = array<i64: 128, 128>}, {pipeline_mode = #tpu.pipeline_mode<synchronous>, transform_indices = @transform_2, window_bounds = array<i64: 1, 128>}, {transform_indices = @transform_3, window_bounds = array<i64: 16, 128>}]} {
    %c0 = arith.constant 0 : index
    %c0_0 = arith.constant 0 : index
    %0 = vector.load %arg1[%c0, %c0_0] : memref<16x128xf32, #tpu.memory_space<vmem>>, vector<16x128xf32>
    %1 = arith.truncf %0 : vector<16x128xf32> to vector<16x128xbf16>
    %c0_1 = arith.constant 0 : index
    %c0_2 = arith.constant 0 : index
    %2 = vector.load %arg2[%c0_1, %c0_2] : memref<128x128xbf16, #tpu.memory_space<vmem>>, vector<128x128xbf16>
    %cst = arith.constant dense<0.000000e+00> : vector<16x128xf32>
    %3 = tpu.matmul %1, %2, %cst {dimension_numbers = #tpu.dot_dimension_numbers<[1], [0], [0], [1], [0, 0, 1, 1], [], []>} : vector<16x128xbf16>, vector<128x128xbf16>, vector<16x128xf32> -> vector<16x128xf32>
    %c0_3 = arith.constant 0 : index
    %c0_4 = arith.constant 0 : index
    %4 = vector.load %arg3[%c0_3, %c0_4] : memref<1x128xf32, #tpu.memory_space<vmem>>, vector<1x128xf32>
    %5 = vector.broadcast %4 : vector<1x128xf32> to vector<16x128xf32>
    %6 = arith.addf %3, %5 : vector<16x128xf32>
    %7 = arith.addf %6, %0 : vector<16x128xf32>
    %c0_5 = arith.constant 0 : index
    %c0_6 = arith.constant 0 : index
    %8 = vector.load %arg4[%c0_5, %c0_6] : memref<16x128xf32, #tpu.memory_space<vmem>>, vector<16x128xf32>
    tpu.vector_store %arg4[%c0_5, %c0_6], %7 {strides = array<i32>} : memref<16x128xf32, #tpu.memory_space<vmem>>, vector<16x128xf32>,
    return
  }
  func.func @transform_0(%arg0: i32) -> (i32, i32) {
    %c0_i32 = arith.constant 0 : i32
    %c0_i32_0 = arith.constant 0 : i32
    return %arg0, %c0_i32 : i32, i32
  }
  func.func @transform_1(%arg0: i32) -> (i32, i32) {
    %c0_i32 = arith.constant 0 : i32
    %c0_i32_0 = arith.constant 0 : i32
    %c0_i32_1 = arith.constant 0 : i32
    return %c0_i32, %c0_i32_0 : i32, i32
  }
  func.func @transform_2(%arg0: i32) -> (i32, i32) {
    %c0_i32 = arith.constant 0 : i32
    %c0_i32_0 = arith.constant 0 : i32
    %c0_i32_1 = arith.constant 0 : i32
    return %c0_i32, %c0_i32_0 : i32, i32
  }
  func.func @transform_3(%arg0: i32) -> (i32, i32) {
    %c0_i32 = arith.constant 0 : i32
    %c0_i32_0 = arith.constant 0 : i32
    return %arg0, %c0_i32 : i32, i32
  }
}

</mosaic_0001>

<bundles_post_ra>
// kernel: tpu_custom_call.1
= control target key start
LH: loop header
LB: loop body
LE: loop exit
PB: predicated region body
PF: predicated region fallthrough
CT: control target
= control target key end

     0   :  { %8 = vsyncpa [#allocation3], 0  ;;  %s327_s0 = inlined_call_operand.hbm [shape: f32[16,128], index: 0, kind: input, shape index: {}]   ;;  %s328_s1 = inlined_call_operand.hbm [shape: bf16[128,128], index: 1, kind: input, shape index: {}]   ;;  %s329_s2 = inlined_call_operand.vmem [shape: f32[1,128], index: 2, kind: input, shape index: {}]   ;;  %s330_s3 = inlined_call_operand.hbm [shape: f32[16,128], index: 3, kind: output, shape index: {}]  }
   0x1   :  { %9 = vsyncpa [#allocation6], 0 }
   0x2   :  { %10 = vsyncpa [#allocation4], 0  ;;  %s15_s14 = sshll.u32 %s327_s0, 4  ;;  %s282_s15 = smov [#allocation2]   ;;  %s16_s14 = int_to_ptr.hbm [resolvable:$true] %s15_s14 }
   0x3   :  { %s17_s16 = sshll.u32 %s282_s15, 4  ;;  %s28_s19 = sshll.u32 %s328_s1, 4  ;;  %s18_s16 = int_to_ptr.vmem [resolvable:$true] %s17_s16  ;;  %s29_s19 = int_to_ptr.hbm [resolvable:$true] %s28_s19 }
   0x4   :  { %s283_s20 = smov 128   ;;  %s284_s21 = smov 8  }
   0x5   :  { %23 = dma.hbm_to_vmem [thread:$0]  %s16_s14, 256, %s18_s16, [#allocation3], %s283_s20, %s283_s20, %s284_s21  }
   0x6   :  { %s285_s22 = smov [#allocation5]   ;;  %s286_s24 = smov 64  }
   0x7   :  { %s30_s23 = sshll.u32 %s285_s22, 4  ;;  %s287_s0 = smov 4   ;;  %s31_s23 = int_to_ptr.vmem [resolvable:$true] %s30_s23 }
   0x8   :  { %36 = dma.hbm_to_vmem [thread:$0]  %s29_s19, 1024, %s31_s23, [#allocation6], %s286_s24, %s286_s24, %s287_s0  }
   0x9   :  { %276 = dma.done.wait [#allocation3], 256  }
   0xa   :  { %277 = vsyncadd [#allocation3], 4294967040 }
   0xb   :  { %278 = dma.done.wait [#allocation6], 1024  }
   0xc   :  { %279 = vsyncadd [#allocation6], 4294966272  ;;  %v195_v0 = vld [vmem:[#allocation5 + $0x38] sm:$0xff]  ;;  %v194_v1 = vld [vmem:[#allocation5 + $0x30] sm:$0xff]  ;;  %s288_s26 = smov [#allocation7]   ;;  %s142_s30 = sshll.u32 %s330_s3, 4  ;;  %s143_s30 = int_to_ptr.hbm [resolvable:$true] %s142_s30 }
   0xd   :  { %118 = vmatpush.bf16.msra.mxu0 %v195_v0  ;;  %v193_v2 = vld [vmem:[#allocation5 + $0x28] sm:$0xff]  ;;  %v192_v3 = vld [vmem:[#allocation5 + $0x20] sm:$0xff]  ;;  %v191_v4 = vld [vmem:[#allocation5 + $0x18] sm:$0xff]  ;;  %s140_s27 = sshll.u32 %s288_s26, 4  ;;  %s141_s27 = int_to_ptr.vmem [resolvable:$true] %s140_s27 }
   0xe   :  { %v190_v5 = vld [vmem:[#allocation5 + $0x10] sm:$0xff]  ;;  %v189_v6 = vld [vmem:[#allocation5 + $0x8] sm:$0xff]  ;;  %v188_v7 = vld [vmem:[#allocation5] sm:$0xff] }
   0xf   :  { %v47_v8 = vld [vmem:[#allocation2] sm:$0xff]  ;;  %v48_v9 = vld [vmem:[#allocation2 + $0x8] sm:$0xff] }
  0x10   :  { %v49_v10 = vpack.c.bf16 %v48_v9, %v47_v8  ;;  %v203_v11 = vld [vmem:[%s329_s2] ss:$0 sm:$0xff] }
  0x11   :  { %119 = vmatpush.bf16.msra.mxu0 %v194_v1 }
  0x15   :  { %120 = vmatpush.bf16.msra.mxu0 %v193_v2 }
  0x19   :  { %121 = vmatpush.bf16.msra.mxu0 %v192_v3 }
  0x1d   :  { %122 = vmatpush.bf16.msra.mxu0 %v191_v4 }
  0x21   :  { %123 = vmatpush.bf16.msra.mxu0 %v190_v5 }
  0x25   :  { %124 = vmatpush.bf16.msra.mxu0 %v189_v6 }
  0x29   :  { %125 = vmatpush.bf16.msra.mxu0 %v188_v7 }
  0x2c   :  { %126 = vmatmul.bf16.vlgmr.msra.gmra.mxu0 %v49_v10 }
  0xa9   :  { %v127_v12 = vpop.f32.mrf.mxu0 }
  0xaa   :  { %v128_v13 = vadd.f32 %v203_v11, %v127_v12 }
  0xac   :  { %v132_v14 = vadd.f32 %v128_v13, %v47_v8 }
  0xae   :  { %134 = vst [vmem:[#allocation7] sm:$0xff] %v132_v14 }
  0xb1   :  { %v129_v15 = vpop.f32.mrf.mxu0 }
  0xb2   :  { %v130_v16 = vadd.f32 %v203_v11, %v129_v15 }
  0xb4   :  { %v133_v17 = vadd.f32 %v130_v16, %v48_v9 }
  0xb6   :  { %135 = vst [vmem:[#allocation7 + $0x8] sm:$0xff] %v133_v17 }
  0xb7   :  { %148 = dma.vmem_to_hbm [thread:$0]  %s141_s27, 256, %s143_s30, [#allocation4], %s283_s20, %s283_s20, %s284_s21  }
  0xb8   :  { %280 = dma.done.wait [#allocation4], 256  }
  0xb9   :  { %281 = vsyncadd [#allocation4], 4294967040 }
  0xba   :  { %153 = vsyncpa [#allocation3], 1 }
  0xbb   :  { %154 = vsyncpa [#allocation6], 1 }
  0xbc   :  { %155 = vsyncpa [#allocation4], 1 }

</bundles_post_ra>
